<compile_context>
chip_gen: v7x
topology: tpu7x:2x2x1
jax: 0.10.0
libtpu: 0.0.40
codegen_flags: <defaults>
</compile_context>

<pallas_src>
import functools

import jax
import jax.numpy as jnp
from jax.experimental import pallas as pl
from jax.experimental.pallas import tpu as pltpu

H1 = 128          # first hidden width (already lane-dense)
H2 = 64           # second hidden width (logical)
H2_PAD = 128      # second hidden width as computed in-kernel (lane-dense)
LANE = 128


def _round_up(x, m):
    return ((x + m - 1) // m) * m


def mlp_kernel(x_ref, w1_ref, b1_ref, w2_ref, b2_ref, w3_ref, b3_ref,
               out_ref, f1_ref, f2_ref):
    # Entire hot path (3 matmuls + bias + ReLU) runs on-chip in one kernel body.
    x = x_ref[...]
    f1 = jnp.dot(x, w1_ref[...], preferred_element_type=jnp.float32) + b1_ref[...]
    f1 = jnp.maximum(f1, 0.0)
    f2 = jnp.dot(f1, w2_ref[...], preferred_element_type=jnp.float32) + b2_ref[...]
    f2 = jnp.maximum(f2, 0.0)                       # padded cols are exactly 0
    out = jnp.dot(f2, w3_ref[...], preferred_element_type=jnp.float32) + b3_ref[...]
    f1_ref[...] = f1                                # (B, 128) lane-dense store
    f2_ref[...] = f2                                # (B, 128) lane-dense store
    out_ref[...] = out                              # (B, 128) lane-dense store


@functools.partial(jax.jit, static_argnames=("tm",))
def q_function_forward(x, params, *, tm=1024):
    """x: (B, input_size) f32. params: dict of pre-transposed weights/biases.

    Returns (out, f1, f2) with shapes (B, out_dim), (B, 128), (B, 64).
    """
    w1, b1 = params["w1"], params["b1"]             # (in_dim, 128), (1, 128)
    w2, b2 = params["w2"], params["b2"]             # (128, 64),     (1, 64)
    w3, b3 = params["w3"], params["b3"]             # (64, out_dim), (1, out_dim)

    B, in_dim = x.shape
    out_dim = w3.shape[1]
    out_pad = _round_up(out_dim, LANE)

    # Zero-pad the narrow dims so every in-kernel matmul N and every HBM
    # writeback is a full 128-lane slab (unmasked vst).  Exact in f32.
    w2p = jnp.pad(w2, ((0, 0), (0, H2_PAD - H2)))
    b2p = jnp.pad(b2, ((0, 0), (0, H2_PAD - H2)))
    w3p = jnp.pad(w3, ((0, H2_PAD - H2), (0, out_pad - out_dim)))
    b3p = jnp.pad(b3, ((0, 0), (0, out_pad - out_dim)))

    # Batch tiling: largest tile <= tm that covers the (sublane-rounded) batch,
    # then pad the batch so the grid divides evenly.
    assert tm % 8 == 0, "batch tile must be a multiple of the 8-row sublane"
    tm_eff = min(tm, _round_up(B, 8))
    Bp = _round_up(B, tm_eff)
    xp = jnp.pad(x, ((0, Bp - B), (0, 0)))

    grid = (Bp // tm_eff,)

    # Weights/biases use a constant index_map -> same VMEM block every step
    # (DMA'd once, resident across the whole grid).
    def bcast(shape):
        return pl.BlockSpec(shape, lambda i, _s=shape: tuple(0 for _ in _s))

    out_shapes = (
        jax.ShapeDtypeStruct((Bp, out_pad), jnp.float32),   # out (padded)
        jax.ShapeDtypeStruct((Bp, H1), jnp.float32),        # f1
        jax.ShapeDtypeStruct((Bp, H2_PAD), jnp.float32),    # f2 (padded)
    )

    flops = 2 * Bp * (in_dim * H1 + H1 * H2_PAD + H2_PAD * out_pad)
    bytes_accessed = 4 * (
        Bp * in_dim                                   # x
        + in_dim * H1 + H1 + H1 * H2_PAD + H2_PAD     # w1,b1,w2,b2
        + H2_PAD * out_pad + out_pad                  # w3,b3
        + Bp * (out_pad + H1 + H2_PAD)                # out, f1, f2
    )

    out_p, f1, f2_p = pl.pallas_call(
        mlp_kernel,
        out_shape=out_shapes,
        grid_spec=pltpu.PrefetchScalarGridSpec(
            num_scalar_prefetch=0,
            grid=grid,
            in_specs=[
                pl.BlockSpec((tm_eff, in_dim), lambda i: (i, 0)),  # x
                bcast((in_dim, H1)),                               # w1
                bcast((1, H1)),                                    # b1
                bcast((H1, H2_PAD)),                               # w2 (padded)
                bcast((1, H2_PAD)),                                # b2 (padded)
                bcast((H2_PAD, out_pad)),                          # w3 (padded)
                bcast((1, out_pad)),                               # b3 (padded)
            ],
            out_specs=[
                pl.BlockSpec((tm_eff, out_pad), lambda i: (i, 0)),
                pl.BlockSpec((tm_eff, H1), lambda i: (i, 0)),
                pl.BlockSpec((tm_eff, H2_PAD), lambda i: (i, 0)),
            ],
        ),
        compiler_params=pltpu.CompilerParams(
            dimension_semantics=("parallel",),
            vmem_limit_bytes=64 * 1024 * 1024,
        ),
        cost_estimate=pl.CostEstimate(
            flops=flops, transcendentals=0, bytes_accessed=bytes_accessed),
    )(xp, w1, b1, w2p, b2p, w3p, b3p)

    # Slice the logical shapes back out (batch + lane padding).
    out = out_p[:B, :out_dim]
    f1 = f1[:B]
    f2 = f2_p[:B, :H2]
    return out, f1, f2


def init_params(key, input_size, output_size):
    """Deterministic init mirroring nn.Linear shapes (stored pre-transposed)."""
    k1, k2, k3, k4, k5, k6 = jax.random.split(key, 6)

    def linear(kw, kb, fan_in, fan_out):
        bound = 1.0 / jnp.sqrt(fan_in)
        w = jax.random.uniform(kw, (fan_in, fan_out), jnp.float32, -bound, bound)
        b = jax.random.uniform(kb, (1, fan_out), jnp.float32, -bound, bound)
        return w, b

    w1, b1 = linear(k1, k2, input_size, H1)
    w2, b2 = linear(k3, k4, H1, H2)
    w3, b3 = linear(k5, k6, H2, output_size)
    return dict(w1=w1, b1=b1, w2=w2, b2=b2, w3=w3, b3=b3)


def reference_forward(x, p):
    f1 = jnp.maximum(x @ p["w1"] + p["b1"], 0.0)
    f2 = jnp.maximum(f1 @ p["w2"] + p["b2"], 0.0)
    out = f2 @ p["w3"] + p["b3"]
    return out, f1, f2


if __name__ == "__main__":
    input_size = 32
    output_size = 8
    batch = 16            # small, and NOT a multiple of the default tile

    key = jax.random.PRNGKey(0)
    kx, kp = jax.random.split(key)
    x = jax.random.normal(kx, (batch, input_size), jnp.float32)
    params = init_params(kp, input_size, output_size)

    out, f1, f2 = jax.block_until_ready(q_function_forward(x, params))

    # sanity check vs pure-JAX reference
    ref_out, ref_f1, ref_f2 = reference_forward(x, params)
    assert out.shape == (batch, output_size)
    assert f1.shape == (batch, 128) and f2.shape == (batch, 64)
    assert jnp.allclose(out, ref_out, atol=1e-5, rtol=1e-5)
    assert jnp.allclose(f1, ref_f1, atol=1e-5, rtol=1e-5)
    assert jnp.allclose(f2, ref_f2, atol=1e-5, rtol=1e-5)

    # also exercise a larger, multi-grid-step batch (2048 rows -> 2 tiles)
    xb = jax.random.normal(kx, (2048, input_size), jnp.float32)
    outb, f1b, f2b = jax.block_until_ready(q_function_forward(xb, params))
    rob, rf1b, rf2b = reference_forward(xb, params)
    assert jnp.allclose(outb, rob, atol=1e-5, rtol=1e-5)
    assert jnp.allclose(f1b, rf1b, atol=1e-5, rtol=1e-5)
    assert jnp.allclose(f2b, rf2b, atol=1e-5, rtol=1e-5)

    # odd batch (not a multiple of 8) exercises the padding path
    xo = jax.random.normal(kx, (13, input_size), jnp.float32)
    outo, f1o, f2o = jax.block_until_ready(q_function_forward(xo, params))
    roo, rf1o, rf2o = reference_forward(xo, params)
    assert jnp.allclose(outo, roo, atol=1e-5, rtol=1e-5)
    assert jnp.allclose(f1o, rf1o, atol=1e-5, rtol=1e-5)
    assert jnp.allclose(f2o, rf2o, atol=1e-5, rtol=1e-5)

    print("KERNEL_OK")
</pallas_src>

<mosaic_0001>
module attributes {stable_mosaic.version = 11 : i64} {
  func.func @mlp_kernel(%arg0: i32, %arg1: memref<16x32xf32, #tpu.memory_space<vmem>>, %arg2: memref<32x128xf32, #tpu.memory_space<vmem>>, %arg3: memref<1x128xf32, #tpu.memory_space<vmem>>, %arg4: memref<128x128xf32, #tpu.memory_space<vmem>>, %arg5: memref<1x128xf32, #tpu.memory_space<vmem>>, %arg6: memref<128x128xf32, #tpu.memory_space<vmem>>, %arg7: memref<1x128xf32, #tpu.memory_space<vmem>>, %arg8: memref<16x128xf32, #tpu.memory_space<vmem>>, %arg9: memref<16x128xf32, #tpu.memory_space<vmem>>, %arg10: memref<16x128xf32, #tpu.memory_space<vmem>>) attributes {dimension_semantics = [#tpu.dimension_semantics<parallel>], iteration_bounds = array<i64: 1>, scalar_prefetch = 0 : i64, scratch_operands = 0 : i64, tpu.core_type = #tpu.core_type<tc>, window_params = [{transform_indices = @transform_0, window_bounds = array<i64: 16, 32>}, {pipeline_mode = #tpu.pipeline_mode<synchronous>, transform_indices = @transform_1, window_bounds = array<i64: 32, 128>}, {pipeline_mode = #tpu.pipeline_mode<synchronous>, transform_indices = @transform_2, window_bounds = array<i64: 1, 128>}, {pipeline_mode = #tpu.pipeline_mode<synchronous>, transform_indices = @transform_3, window_bounds = array<i64: 128, 128>}, {pipeline_mode = #tpu.pipeline_mode<synchronous>, transform_indices = @transform_4, window_bounds = array<i64: 1, 128>}, {pipeline_mode = #tpu.pipeline_mode<synchronous>, transform_indices = @transform_5, window_bounds = array<i64: 128, 128>}, {pipeline_mode = #tpu.pipeline_mode<synchronous>, transform_indices = @transform_6, window_bounds = array<i64: 1, 128>}, {transform_indices = @transform_7, window_bounds = array<i64: 16, 128>}, {transform_indices = @transform_8, window_bounds = array<i64: 16, 128>}, {transform_indices = @transform_9, window_bounds = array<i64: 16, 128>}]} {
    %c0 = arith.constant 0 : index
    %c0_0 = arith.constant 0 : index
    %0 = vector.load %arg1[%c0, %c0_0] : memref<16x32xf32, #tpu.memory_space<vmem>>, vector<16x32xf32>
    %c0_1 = arith.constant 0 : index
    %c0_2 = arith.constant 0 : index
    %1 = vector.load %arg2[%c0_1, %c0_2] : memref<32x128xf32, #tpu.memory_space<vmem>>, vector<32x128xf32>
    %cst = arith.constant dense<0.000000e+00> : vector<16x128xf32>
    %2 = tpu.matmul %0, %1, %cst {dimension_numbers = #tpu.dot_dimension_numbers<[1], [0], [0], [1], [0, 0, 1, 1], [], []>} : vector<16x32xf32>, vector<32x128xf32>, vector<16x128xf32> -> vector<16x128xf32>
    %c0_3 = arith.constant 0 : index
    %c0_4 = arith.constant 0 : index
    %3 = vector.load %arg3[%c0_3, %c0_4] : memref<1x128xf32, #tpu.memory_space<vmem>>, vector<1x128xf32>
    %4 = vector.broadcast %3 : vector<1x128xf32> to vector<16x128xf32>
    %5 = arith.addf %2, %4 : vector<16x128xf32>
    %cst_5 = arith.constant 0.000000e+00 : f32
    %6 = vector.broadcast %cst_5 : f32 to vector<16x128xf32>
    %7 = arith.maximumf %5, %6 : vector<16x128xf32>
    %c0_6 = arith.constant 0 : index
    %c0_7 = arith.constant 0 : index
    %8 = vector.load %arg4[%c0_6, %c0_7] : memref<128x128xf32, #tpu.memory_space<vmem>>, vector<128x128xf32>
    %cst_8 = arith.constant dense<0.000000e+00> : vector<16x128xf32>
    %9 = tpu.matmul %7, %8, %cst_8 {dimension_numbers = #tpu.dot_dimension_numbers<[1], [0], [0], [1], [0, 0, 1, 1], [], []>} : vector<16x128xf32>, vector<128x128xf32>, vector<16x128xf32> -> vector<16x128xf32>
    %c0_9 = arith.constant 0 : index
    %c0_10 = arith.constant 0 : index
    %10 = vector.load %arg5[%c0_9, %c0_10] : memref<1x128xf32, #tpu.memory_space<vmem>>, vector<1x128xf32>
    %11 = vector.broadcast %10 : vector<1x128xf32> to vector<16x128xf32>
    %12 = arith.addf %9, %11 : vector<16x128xf32>
    %cst_11 = arith.constant 0.000000e+00 : f32
    %13 = vector.broadcast %cst_11 : f32 to vector<16x128xf32>
    %14 = arith.maximumf %12, %13 : vector<16x128xf32>
    %c0_12 = arith.constant 0 : index
    %c0_13 = arith.constant 0 : index
    %15 = vector.load %arg6[%c0_12, %c0_13] : memref<128x128xf32, #tpu.memory_space<vmem>>, vector<128x128xf32>
    %cst_14 = arith.constant dense<0.000000e+00> : vector<16x128xf32>
    %16 = tpu.matmul %14, %15, %cst_14 {dimension_numbers = #tpu.dot_dimension_numbers<[1], [0], [0], [1], [0, 0, 1, 1], [], []>} : vector<16x128xf32>, vector<128x128xf32>, vector<16x128xf32> -> vector<16x128xf32>
    %c0_15 = arith.constant 0 : index
    %c0_16 = arith.constant 0 : index
    %17 = vector.load %arg7[%c0_15, %c0_16] : memref<1x128xf32, #tpu.memory_space<vmem>>, vector<1x128xf32>
    %18 = vector.broadcast %17 : vector<1x128xf32> to vector<16x128xf32>
    %19 = arith.addf %16, %18 : vector<16x128xf32>
    %c0_17 = arith.constant 0 : index
    %c0_18 = arith.constant 0 : index
    %20 = vector.load %arg9[%c0_17, %c0_18] : memref<16x128xf32, #tpu.memory_space<vmem>>, vector<16x128xf32>
    tpu.vector_store %arg9[%c0_17, %c0_18], %7 {strides = array<i32>} : memref<16x128xf32, #tpu.memory_space<vmem>>, vector<16x128xf32>,
    %c0_19 = arith.constant 0 : index
    %c0_20 = arith.constant 0 : index
    %21 = vector.load %arg10[%c0_19, %c0_20] : memref<16x128xf32, #tpu.memory_space<vmem>>, vector<16x128xf32>
    tpu.vector_store %arg10[%c0_19, %c0_20], %14 {strides = array<i32>} : memref<16x128xf32, #tpu.memory_space<vmem>>, vector<16x128xf32>,
    %c0_21 = arith.constant 0 : index
    %c0_22 = arith.constant 0 : index
    %22 = vector.load %arg8[%c0_21, %c0_22] : memref<16x128xf32, #tpu.memory_space<vmem>>, vector<16x128xf32>
    tpu.vector_store %arg8[%c0_21, %c0_22], %19 {strides = array<i32>} : memref<16x128xf32, #tpu.memory_space<vmem>>, vector<16x128xf32>,
    return
  }
  func.func @transform_0(%arg0: i32) -> (i32, i32) {
    %c0_i32 = arith.constant 0 : i32
    %c0_i32_0 = arith.constant 0 : i32
    return %arg0, %c0_i32 : i32, i32
  }
  func.func @transform_1(%arg0: i32) -> (i32, i32) {
    %c0_i32 = arith.constant 0 : i32
    %c0_i32_0 = arith.constant 0 : i32
    %c0_i32_1 = arith.constant 0 : i32
    return %c0_i32, %c0_i32_0 : i32, i32
  }
  func.func @transform_2(%arg0: i32) -> (i32, i32) {
    %c0_i32 = arith.constant 0 : i32
    %c0_i32_0 = arith.constant 0 : i32
    %c0_i32_1 = arith.constant 0 : i32
    return %c0_i32, %c0_i32_0 : i32, i32
  }
  func.func @transform_3(%arg0: i32) -> (i32, i32) {
    %c0_i32 = arith.constant 0 : i32
    %c0_i32_0 = arith.constant 0 : i32
    %c0_i32_1 = arith.constant 0 : i32
    return %c0_i32, %c0_i32_0 : i32, i32
  }
  func.func @transform_4(%arg0: i32) -> (i32, i32) {
    %c0_i32 = arith.constant 0 : i32
    %c0_i32_0 = arith.constant 0 : i32
    %c0_i32_1 = arith.constant 0 : i32
    return %c0_i32, %c0_i32_0 : i32, i32
  }
  func.func @transform_5(%arg0: i32) -> (i32, i32) {
    %c0_i32 = arith.constant 0 : i32
    %c0_i32_0 = arith.constant 0 : i32
    %c0_i32_1 = arith.constant 0 : i32
    return %c0_i32, %c0_i32_0 : i32, i32
  }
  func.func @transform_6(%arg0: i32) -> (i32, i32) {
    %c0_i32 = arith.constant 0 : i32
    %c0_i32_0 = arith.constant 0 : i32
    %c0_i32_1 = arith.constant 0 : i32
    return %c0_i32, %c0_i32_0 : i32, i32
  }
  func.func @transform_7(%arg0: i32) -> (i32, i32) {
    %c0_i32 = arith.constant 0 : i32
    %c0_i32_0 = arith.constant 0 : i32
    return %arg0, %c0_i32 : i32, i32
  }
  func.func @transform_8(%arg0: i32) -> (i32, i32) {
    %c0_i32 = arith.constant 0 : i32
    %c0_i32_0 = arith.constant 0 : i32
    return %arg0, %c0_i32 : i32, i32
  }
  func.func @transform_9(%arg0: i32) -> (i32, i32) {
    %c0_i32 = arith.constant 0 : i32
    %c0_i32_0 = arith.constant 0 : i32
    return %arg0, %c0_i32 : i32, i32
  }
}

</mosaic_0001>

<bundles_post_ra>
// kernel: q_function_forward.1
= control target key start
LH: loop header
LB: loop body
LE: loop exit
PB: predicated region body
PF: predicated region fallthrough
CT: control target
= control target key end

     0   :  { %15 = vsyncpa [#allocation3], 0  ;;  %s1135_s0 = inlined_call_operand.hbm [shape: f32[16,32], index: 0, kind: input, shape index: {}]   ;;  %s1136_s1 = inlined_call_operand.hbm [shape: f32[32,128], index: 1, kind: input, shape index: {}]   ;;  %s1137_s2 = inlined_call_operand.hbm [shape: f32[1,128], index: 2, kind: input, shape index: {}]   ;;  %s1138_s3 = inlined_call_operand.hbm [shape: f32[128,128], index: 3, kind: input, shape index: {}]   ;;  %s1139_s4 = inlined_call_operand.hbm [shape: f32[1,128], index: 4, kind: input, shape index: {}]   ;;  %s1140_s5 = inlined_call_operand.hbm [shape: f32[128,128], index: 5, kind: input, shape index: {}]   ;;  %s1141_s6 = inlined_call_operand.hbm [shape: f32[1,128], index: 6, kind: input, shape index: {}]   ;;  %s1142_s7 = inlined_call_operand.hbm [shape: f32[16,128], index: 7, kind: output, shape index: {0}]   ;;  %s1143_s8 = inlined_call_operand.hbm [shape: f32[16,128], index: 8, kind: output, shape index: {1}]   ;;  %s1144_s9 = inlined_call_operand.hbm [shape: f32[16,128], index: 9, kind: output, shape index: {2}]  }
   0x1   :  { %16 = vsyncpa [#allocation6], 0 }
   0x2   :  { %17 = vsyncpa [#allocation9], 0 }
   0x3   :  { %18 = vsyncpa [#allocation12], 0 }
   0x4   :  { %19 = vsyncpa [#allocation4], 0 }
   0x5   :  { %20 = vsyncpa [#allocation16], 0  ;;  %s916_s30 = smov [#allocation5]   ;;  %s917_s11 = smov [#allocation8]  }
   0x6   :  { %s38_s10 = sshll.u32 %s916_s30, 4  ;;  %s60_s12 = sshll.u32 %s917_s11, 4  ;;  %s39_s10 = int_to_ptr.vmem [resolvable:$true] %s38_s10  ;;  %s978_s12 = int_to_ptr.vmem [resolvable:$true] %s60_s12 }
   0x7   :  { %s684_s15 = scalar_lea.hbm %s1136_s1, 512 }
   0x8   :  { %p685_p0 = scmp.ne.s32.totalorder %s1136_s1, %s684_s15  ;;  %p688_p1 = scmp.lt.u32.totalorder %s684_s15, %s1136_s1 }
   0xa   :  { %p690_p2 = pnand %p688_p1, %p685_p0 }
   0xc   :  { %693 = shalt.err (!%p690_p2)
}
   0xd   :  { %s694_s20 = scalar_lea.vmem %s39_s10, 512  ;;  %p699_p4 = scmp.lt.s32.totalorder %s39_s10, %s39_s10 }
   0xe   :  { %p695_p3 = scmp.ne.s32.totalorder %s39_s10, %s694_s20  ;;  %p700_p5 = scmp.lt.s32.totalorder %s694_s20, %s694_s20 }
  0x10   :  { %p701_p6 = por %p700_p5, %p699_p4 }
  0x12   :  { %p702_p7 = pnand %p701_p6, %p695_p3 }
  0x14   :  { %705 = shalt.err (!%p702_p7)
}
  0x15   :  { %s918_s21 = smov 128   ;;  %s919_s22 = smov 8  }
  0x16   :  { %44 = dma.hbm_to_vmem [thread:$0]  %s1136_s1, 512, %s39_s10, [#allocation6], %s918_s21, %s918_s21, %s919_s22  }
  0x17   :  { %s706_s27 = scalar_lea.hbm %s1138_s3, 2048 }
  0x18   :  { %p707_p8 = scmp.ne.s32.totalorder %s1138_s3, %s706_s27  ;;  %p710_p9 = scmp.lt.u32.totalorder %s706_s27, %s1138_s3 }
  0x1a   :  { %p712_p10 = pnand %p710_p9, %p707_p8 }
  0x1c   :  { %715 = shalt.err (!%p712_p10)
}
  0x1d   :  { %s716_s13 = scalar_lea.vmem %s978_s12, 2048  ;;  %p721_p12 = scmp.lt.s32.totalorder %s978_s12, %s978_s12 }
  0x1e   :  { %p717_p11 = scmp.ne.s32.totalorder %s978_s12, %s716_s13  ;;  %p722_p13 = scmp.lt.s32.totalorder %s716_s13, %s716_s13 }
  0x20   :  { %p723_p0 = por %p722_p13, %p721_p12 }
  0x22   :  { %p724_p1 = pnand %p723_p0, %p717_p11 }
  0x24   :  { %727 = shalt.err (!%p724_p1)
}
  0x25   :  { %66 = dma.hbm_to_vmem [thread:$0]  %s1138_s3, 2048, %s978_s12, [#allocation9], %s918_s21, %s918_s21, %s919_s22  }
  0x26   :  { %s920_s14 = smov [#allocation11]   ;;  %s921_s16 = smov [#allocation2]  }
  0x27   :  { %s82_s15 = sshll.u32 %s920_s14, 4  ;;  %s26_s17 = sshll.u32 %s921_s16, 4  ;;  %s83_s15 = int_to_ptr.vmem [resolvable:$true] %s82_s15  ;;  %s1015_s17 = int_to_ptr.vmem [resolvable:$true] %s26_s17 }
  0x28   :  { %s728_s20 = scalar_lea.hbm %s1140_s5, 2048 }
  0x29   :  { %p729_p2 = scmp.ne.s32.totalorder %s1140_s5, %s728_s20  ;;  %p732_p3 = scmp.lt.u32.totalorder %s728_s20, %s1140_s5 }
  0x2b   :  { %p734_p4 = pnand %p732_p3, %p729_p2 }
  0x2d   :  { %737 = shalt.err (!%p734_p4)
}
  0x2e   :  { %s738_s3 = scalar_lea.vmem %s83_s15, 2048  ;;  %p743_p6 = scmp.lt.s32.totalorder %s83_s15, %s83_s15 }
  0x2f   :  { %p739_p5 = scmp.ne.s32.totalorder %s83_s15, %s738_s3  ;;  %p744_p7 = scmp.lt.s32.totalorder %s738_s3, %s738_s3 }
  0x31   :  { %p745_p8 = por %p744_p7, %p743_p6 }
  0x33   :  { %p746_p9 = pnand %p745_p8, %p739_p5 }
  0x35   :  { %749 = shalt.err (!%p746_p9)
}
  0x36   :  { %88 = dma.hbm_to_vmem [thread:$0]  %s1140_s5, 2048, %s83_s15, [#allocation12], %s918_s21, %s918_s21, %s919_s22  }
  0x37   :  { %s750_s30 = scalar_lea.hbm %s1135_s0, 256 }
  0x38   :  { %p751_p10 = scmp.ne.s32.totalorder %s1135_s0, %s750_s30  ;;  %p754_p11 = scmp.lt.u32.totalorder %s750_s30, %s1135_s0 }
  0x3a   :  { %p756_p12 = pnand %p754_p11, %p751_p10 }
  0x3c   :  { %759 = shalt.err (!%p756_p12)
}
  0x3d   :  { %s760_s14 = scalar_lea.vmem %s1015_s17, 256  ;;  %p765_p0 = scmp.lt.s32.totalorder %s1015_s17, %s1015_s17 }
  0x3e   :  { %p761_p13 = scmp.ne.s32.totalorder %s1015_s17, %s760_s14  ;;  %p766_p1 = scmp.lt.s32.totalorder %s760_s14, %s760_s14 }
  0x40   :  { %p767_p2 = por %p766_p1, %p765_p0 }
  0x42   :  { %p768_p3 = pnand %p767_p2, %p761_p13 }
  0x44   :  { %771 = shalt.err (!%p768_p3)
}
  0x45   :  { %32 = dma.hbm_to_vmem [thread:$0]  %s1135_s0, 256, %s1015_s17, [#allocation3], %s918_s21, %s918_s21, %s919_s22  }
  0x46   :  { %s922_s16 = smov [#allocation7]   ;;  %s923_s19 = smov [#allocation10]  }
  0x47   :  { %s51_s18 = sshll.u32 %s922_s16, 4  ;;  %s73_s20 = sshll.u32 %s923_s19, 4  ;;  %s52_s18 = int_to_ptr.vmem [resolvable:$true] %s51_s18  ;;  %s74_s20 = int_to_ptr.vmem [resolvable:$true] %s73_s20 }
  0x48   :  { %s772_s25 = scalar_lea.hbm %s1137_s2, 16 }
  0x49   :  { %p773_p4 = scmp.ne.s32.totalorder %s1137_s2, %s772_s25  ;;  %p776_p5 = scmp.lt.u32.totalorder %s772_s25, %s1137_s2 }
  0x4b   :  { %p778_p6 = pnand %p776_p5, %p773_p4 }
  0x4d   :  { %781 = shalt.err (!%p778_p6)
}
  0x4e   :  { %s782_s0 = scalar_lea.vmem %s52_s18, 16  ;;  %s786_s17 = scalar_lea.vmem %s52_s18, 32 }
  0x4f   :  { %p783_p7 = scmp.ne.s32.totalorder %s52_s18, %s782_s0  ;;  %p787_p8 = scmp.lt.s32.totalorder %s52_s18, %s52_s18 }
  0x50   :  { %p788_p9 = scmp.lt.s32.totalorder %s786_s17, %s782_s0 }
  0x52   :  { %p789_p10 = por %p788_p9, %p787_p8 }
  0x54   :  { %p790_p11 = pnand %p789_p10, %p783_p7 }
  0x56   :  { %793 = shalt.err (!%p790_p11)
}
  0x57   :  { %54 = dma.hbm_to_vmem [thread:$0]  %s1137_s2, 16, %s52_s18, [#allocation6]  }
  0x58   :  { %s794_s13 = scalar_lea.hbm %s1139_s4, 16 }
  0x59   :  { %p795_p12 = scmp.ne.s32.totalorder %s1139_s4, %s794_s13  ;;  %p798_p13 = scmp.lt.u32.totalorder %s794_s13, %s1139_s4 }
  0x5b   :  { %p800_p0 = pnand %p798_p13, %p795_p12 }
  0x5d   :  { %803 = shalt.err (!%p800_p0)
}
  0x5e   :  { %s804_s15 = scalar_lea.vmem %s74_s20, 16  ;;  %s808_s16 = scalar_lea.vmem %s74_s20, 32 }
  0x5f   :  { %p805_p1 = scmp.ne.s32.totalorder %s74_s20, %s804_s15  ;;  %p809_p2 = scmp.lt.s32.totalorder %s74_s20, %s74_s20 }
  0x60   :  { %p810_p3 = scmp.lt.s32.totalorder %s808_s16, %s804_s15 }
  0x62   :  { %p811_p4 = por %p810_p3, %p809_p2 }
  0x64   :  { %p812_p5 = pnand %p811_p4, %p805_p1 }
  0x66   :  { %815 = shalt.err (!%p812_p5)
}
  0x67   :  { %76 = dma.hbm_to_vmem [thread:$0]  %s1139_s4, 16, %s74_s20, [#allocation9]  }
  0x68   :  { %s924_s19 = smov [#allocation13]   ;;  %s816_s26 = scalar_lea.hbm %s1141_s6, 16 }
  0x69   :  { %s95_s23 = sshll.u32 %s924_s19, 4  ;;  %p817_p6 = scmp.ne.s32.totalorder %s1141_s6, %s816_s26  ;;  %s96_s23 = int_to_ptr.vmem [resolvable:$true] %s95_s23 }
  0x6a   :  { %p820_p7 = scmp.lt.u32.totalorder %s816_s26, %s1141_s6 }
  0x6c   :  { %p822_p8 = pnand %p820_p7, %p817_p6 }
  0x6e   :  { %825 = shalt.err (!%p822_p8)
}
  0x6f   :  { %s826_s17 = scalar_lea.vmem %s96_s23, 16  ;;  %s830_s4 = scalar_lea.vmem %s96_s23, 32 }
  0x70   :  { %p827_p9 = scmp.ne.s32.totalorder %s96_s23, %s826_s17  ;;  %p831_p10 = scmp.lt.s32.totalorder %s96_s23, %s96_s23 }
  0x71   :  { %p832_p11 = scmp.lt.s32.totalorder %s830_s4, %s826_s17 }
  0x73   :  { %p833_p12 = por %p832_p11, %p831_p10 }
  0x75   :  { %p834_p13 = pnand %p833_p12, %p827_p9 }
  0x77   :  { %837 = shalt.err (!%p834_p13)
}
  0x78   :  { %98 = dma.hbm_to_vmem [thread:$0]  %s1141_s6, 16, %s96_s23, [#allocation12]  }
  0x79   :  { %904 = dma.done.wait [#allocation3], 256  }
  0x7a   :  { %905 = vsyncadd [#allocation3], 4294967040 }
  0x7b   :  { %906 = dma.done.wait [#allocation6], 528  }
  0x7c   :  { %907 = vsyncadd [#allocation6], 4294966768 }
  0x7d   :  { %908 = dma.done.wait [#allocation9], 2064  }
  0x7e   :  { %909 = vsyncadd [#allocation9], 4294965232 }
  0x7f   :  { %910 = dma.done.wait [#allocation12], 2064  }
  0x80   :  { %911 = vsyncadd [#allocation12], 4294965232  ;;  %vm133_vm0 = vcmask 261120   ;;  %v122_v0 = vld [vmem:[#allocation5] sm:$0xff]  ;;  %v123_v1 = vld [vmem:[#allocation5 + $0x8] sm:$0xff]  ;;  %s925_s6 = smov [#allocation15]  }
  0x81   :  { %v124_v2 = vld [vmem:[#allocation5 + $0x10] sm:$0xff]  ;;  %v600_v3 = vpack.c.bf16 %v123_v1, %v122_v0  ;;  %v125_v4 = vld [vmem:[#allocation5 + $0x18] sm:$0xff]  ;;  %v217_v7 = vld [vmem:[#allocation8] sm:$0xff]  ;;  %s438_s29 = sshll.u32 %s925_s6, 4  ;;  %s439_s29 = int_to_ptr.vmem [resolvable:$true] %s438_s29 }
  0x82   :  { %v120_v5 = vld [vmem:[#allocation2] sm:$0xff]  ;;  %v604_v6 = vpack.c.bf16 %v125_v4, %v124_v2  ;;  %v220_v11 = vld [vmem:[#allocation8 + $0x18] sm:$0xff]  ;;  %v221_v13 = vld [vmem:[#allocation8 + $0x20] sm:$0xff]  ;;  %s838_s30 = scalar_lea.vmem %s439_s29, 256  ;;  %p843_p1 = scmp.lt.s32.totalorder %s439_s29, %s439_s29 }
  0x83   :  { %527 = vmatprep.mubr.msk.f32.mxu0 %vm133_vm0, %v120_v5  ;;  %v218_v8 = vld [vmem:[#allocation8 + $0x8] sm:$0xff]  ;;  %v219_v9 = vld [vmem:[#allocation8 + $0x10] sm:$0xff]  ;;  %601 = vmatprep.subr.bf16.mxu0 %v600_v3  ;;  %v224_v18 = vld [vmem:[#allocation8 + $0x38] sm:$0xff]  ;;  %p839_p0 = scmp.ne.s32.totalorder %s439_s29, %s838_s30  ;;  %p844_p2 = scmp.lt.s32.totalorder %s838_s30, %s838_s30 }
  0x84   :  { %v608_v10 = vpack.c.bf16 %v218_v8, %v217_v7  ;;  %603 = vmatpush3.bf16.msra.mxu0 %v600_v3  ;;  %v612_v12 = vpack.c.bf16 %v220_v11, %v219_v9  ;;  %v222_v14 = vld [vmem:[#allocation8 + $0x28] sm:$0xff]  ;;  %v121_v16 = vld [vmem:[#allocation2 + $0x8] sm:$0xff]  ;;  %v225_v20 = vld [vmem:[#allocation8 + $0x40] sm:$0xff] }
  0x85   :  { %605 = vmatprep.subr.bf16.mxu0 %v604_v6  ;;  %v616_v15 = vpack.c.bf16 %v222_v14, %v221_v13  ;;  %v223_v17 = vld [vmem:[#allocation8 + $0x30] sm:$0xff]  ;;  %v226_v21 = vld [vmem:[#allocation8 + $0x48] sm:$0xff]  ;;  %v228_v24 = vld [vmem:[#allocation8 + $0x58] sm:$0xff]  ;;  %p845_p3 = por %p844_p2, %p843_p1 }
  0x86   :  { %609 = vmatprep.subr.bf16.mxu1 %v608_v10  ;;  %v620_v19 = vpack.c.bf16 %v224_v18, %v223_v17  ;;  %v624_v22 = vpack.c.bf16 %v226_v21, %v225_v20  ;;  %v227_v23 = vld [vmem:[#allocation8 + $0x50] sm:$0xff]  ;;  %v229_v26 = vld [vmem:[#allocation8 + $0x60] sm:$0xff]  ;;  %v230_v27 = vld [vmem:[#allocation8 + $0x68] sm:$0xff] }
  0x87   :  { %611 = vmatpush3.bf16.msra.mxu1 %v608_v10  ;;  %v628_v25 = vpack.c.bf16 %v228_v24, %v227_v23  ;;  %v632_v28 = vpack.c.bf16 %v230_v27, %v229_v26  ;;  %v231_v29 = vld [vmem:[#allocation8 + $0x70] sm:$0xff]  ;;  %v232_v30 = vld [vmem:[#allocation8 + $0x78] sm:$0xff]  ;;  %v317_v32 = vld [vmem:[#allocation11] sm:$0xff]  ;;  %p846_p4 = pnand %p845_p3, %p839_p0 }
  0x88   :  { %613 = vmatprep.subr.bf16.mxu1 %v612_v12  ;;  %607 = vmatpush3.bf16.msra.mxu0 %v604_v6  ;;  %v636_v31 = vpack.c.bf16 %v232_v30, %v231_v29  ;;  %v318_v33 = vld [vmem:[#allocation11 + $0x8] sm:$0xff]  ;;  %v319_v34 = vld [vmem:[#allocation11 + $0x10] sm:$0xff]  ;;  %v320_v36 = vld [vmem:[#allocation11 + $0x18] sm:$0xff] }
  0x89   :  { %v640_v35 = vpack.c.bf16 %v318_v33, %v317_v32  ;;  %v644_v37 = vpack.c.bf16 %v320_v36, %v319_v34  ;;  %v321_v38 = vld [vmem:[#allocation11 + $0x20] sm:$0xff]  ;;  %v322_v39 = vld [vmem:[#allocation11 + $0x28] sm:$0xff]  ;;  %v323_v41 = vld [vmem:[#allocation11 + $0x30] sm:$0xff] }
  0x8a   :  { %v648_v40 = vpack.c.bf16 %v322_v39, %v321_v38  ;;  %v324_v42 = vld [vmem:[#allocation11 + $0x38] sm:$0xff]  ;;  %v325_v44 = vld [vmem:[#allocation11 + $0x40] sm:$0xff]  ;;  %v326_v45 = vld [vmem:[#allocation11 + $0x48] sm:$0xff] }
  0x8b   :  { %615 = vmatpush3.bf16.msra.mxu1 %v612_v12  ;;  %528 = vmatmul.mubr.msk.f32.vlgmr.msra.gmra.mrb[0].mxu0 %vm133_vm0, %v121_v16  ;;  %v652_v43 = vpack.c.bf16 %v324_v42, %v323_v41  ;;  %v656_v46 = vpack.c.bf16 %v326_v45, %v325_v44  ;;  %v327_v47 = vld [vmem:[#allocation11 + $0x50] sm:$0xff]  ;;  %v328_v48 = vld [vmem:[#allocation11 + $0x58] sm:$0xff]  ;;  %v329_v50 = vld [vmem:[#allocation11 + $0x60] sm:$0xff] }
  0x8c   :  { %617 = vmatprep.subr.bf16.mxu1 %v616_v15  ;;  %641 = vmatprep.subr.bf16.mxu0 %v640_v35  ;;  %v660_v49 = vpack.c.bf16 %v328_v48, %v327_v47  ;;  %v330_v51 = vld [vmem:[#allocation11 + $0x68] sm:$0xff]  ;;  %v472_v53 = vld [vmem:[#allocation7] ss:$0 sm:$0xff]  ;;  %v331_v60 = vld [vmem:[#allocation11 + $0x70] sm:$0xff] }
  0x8d   :  { %643 = vmatpush3.bf16.msra.mxu0 %v640_v35  ;;  %v664_v52 = vpack.c.bf16 %v330_v51, %v329_v50  ;;  %v332_v61 = vld [vmem:[#allocation11 + $0x78] sm:$0xff] }
  0x8e   :  { %645 = vmatprep.subr.bf16.mxu0 %v644_v37  ;;  %v668_v62 = vpack.c.bf16 %v332_v61, %v331_v60  ;;  %v475_v63 = vld [vmem:[#allocation10] ss:$0 sm:$0xff] }
  0x8f   :  { %619 = vmatpush3.bf16.msra.mxu1 %v616_v15 }
  0x90   :  { %621 = vmatprep.subr.bf16.mxu1 %v620_v19 }
  0x91   :  { %647 = vmatpush3.bf16.msra.mxu0 %v644_v37 }
  0x92   :  { %649 = vmatprep.subr.bf16.mxu0 %v648_v40 }
  0x93   :  { %623 = vmatpush3.bf16.msra.mxu1 %v620_v19 }
  0x94   :  { %625 = vmatprep.subr.bf16.mxu1 %v624_v22 }
  0x95   :  { %651 = vmatpush3.bf16.msra.mxu0 %v648_v40 }
  0x96   :  { %653 = vmatprep.subr.bf16.mxu0 %v652_v43 }
  0x97   :  { %627 = vmatpush3.bf16.msra.mxu1 %v624_v22 }
  0x98   :  { %629 = vmatprep.subr.bf16.mxu1 %v628_v25 }
  0x99   :  { %655 = vmatpush3.bf16.msra.mxu0 %v652_v43 }
  0x9a   :  { %657 = vmatprep.subr.bf16.mxu0 %v656_v46 }
  0x9b   :  { %631 = vmatpush3.bf16.msra.mxu1 %v628_v25 }
  0x9c   :  { %633 = vmatprep.subr.bf16.mxu1 %v632_v28 }
  0x9d   :  { %659 = vmatpush3.bf16.msra.mxu0 %v656_v46 }
  0x9e   :  { %661 = vmatprep.subr.bf16.mxu0 %v660_v49 }
  0x9f   :  { %635 = vmatpush3.bf16.msra.mxu1 %v632_v28 }
  0xa0   :  { %637 = vmatprep.subr.bf16.mxu1 %v636_v31 }
  0xa1   :  { %663 = vmatpush3.bf16.msra.mxu0 %v660_v49 }
  0xa2   :  { %665 = vmatprep.subr.bf16.mxu0 %v664_v52 }
  0xa3   :  { %639 = vmatpush3.bf16.msra.mxu1 %v636_v31 }
  0xa5   :  { %667 = vmatpush3.bf16.msra.mxu0 %v664_v52 }
  0xa6   :  { %669 = vmatprep.subr.bf16.mxu0 %v668_v62 }
  0xa9   :  { %671 = vmatpush3.bf16.msra.mxu0 %v668_v62 }
 0x15e   :  { %v529_v54 = vpop.f32.mrb[0].mxu0 }
 0x15f   :  { %v212_v55 = vadd.f32 %v529_v54, %v472_v53  ;;  %v206_v56 = vpop.f32.mrb[1].mxu0 }
 0x160   :  { %v207_v57 = vadd.f32 %v472_v53, %v206_v56 }
 0x161   :  { %v216_v58 = vmax.f32 %v212_v55, 0.0 }
 0x162   :  { %v215_v59 = vmax.f32 %v207_v57, 0.0 }
 0x163   :  { %416 = vst [vmem:[#allocation15 + $0x8] sm:$0xff] %v216_v58 }
 0x164   :  { %415 = vst [vmem:[#allocation15] sm:$0xff] %v215_v59  ;;  %562 = vmatprep.mubr.f32.mxu1 %v215_v59 }
 0x165   :  { %563 = vmatmul.mubr.f32.vlgmr.msra.gmra.mrb[0].mxu1 %v216_v58 }
 0x238   :  { %v564_v0 = vpop.f32.mrb[0].mxu1 }
 0x239   :  { %v312_v1 = vadd.f32 %v564_v0, %v475_v63  ;;  %v306_v2 = vpop.f32.mrb[1].mxu1 }
 0x23a   :  { %v307_v3 = vadd.f32 %v475_v63, %v306_v2 }
 0x23b   :  { %v316_v4 = vmax.f32 %v312_v1, 0.0 }
 0x23c   :  { %v315_v5 = vmax.f32 %v307_v3, 0.0 }
 0x23d   :  { %418 = vst [vmem:[#allocation17 + $0x8] sm:$0xff] %v316_v4 }
 0x23e   :  { %417 = vst [vmem:[#allocation17] sm:$0xff] %v315_v5  ;;  %597 = vmatprep.mubr.f32.mxu0 %v315_v5 }
 0x23f   :  { %598 = vmatmul.mubr.f32.vlgmr.msra.gmra.mrb[2].mxu0 %v316_v4 }
 0x240   :  { %849 = shalt.err (!%p846_p4)
}
 0x241   :  { %s850_s1 = scalar_lea.hbm %s1143_s8, 256 }
 0x242   :  { %p851_p5 = scmp.ne.s32.totalorder %s1143_s8, %s850_s1  ;;  %p854_p6 = scmp.lt.u32.totalorder %s850_s1, %s1143_s8 }
 0x244   :  { %p856_p7 = pnand %p854_p6, %p851_p5 }
 0x246   :  { %859 = shalt.err (!%p856_p7)
}
 0x247   :  { %444 = dma.vmem_to_hbm [thread:$0]  %s439_s29, 256, %s1143_s8, [#allocation16], %s918_s21, %s918_s21, %s919_s22  }
 0x248   :  { %s926_s18 = smov [#allocation17]  }
 0x249   :  { %s450_s19 = sshll.u32 %s926_s18, 4  ;;  %s451_s19 = int_to_ptr.vmem [resolvable:$true] %s450_s19 }
 0x24a   :  { %s860_s23 = scalar_lea.vmem %s451_s19, 256  ;;  %p865_p9 = scmp.lt.s32.totalorder %s451_s19, %s451_s19 }
 0x24b   :  { %p861_p8 = scmp.ne.s32.totalorder %s451_s19, %s860_s23  ;;  %p866_p10 = scmp.lt.s32.totalorder %s860_s23, %s860_s23 }
 0x24d   :  { %p867_p11 = por %p866_p10, %p865_p9 }
 0x24f   :  { %p868_p12 = pnand %p867_p11, %p861_p8 }
 0x251   :  { %871 = shalt.err (!%p868_p12)
}
 0x252   :  { %s872_s26 = scalar_lea.hbm %s1144_s9, 256 }
 0x253   :  { %p873_p13 = scmp.ne.s32.totalorder %s1144_s9, %s872_s26  ;;  %p876_p0 = scmp.lt.u32.totalorder %s872_s26, %s1144_s9 }
 0x255   :  { %p878_p1 = pnand %p876_p0, %p873_p13 }
 0x257   :  { %881 = shalt.err (!%p878_p1)
}
 0x258   :  { %456 = dma.vmem_to_hbm [thread:$0]  %s451_s19, 256, %s1144_s9, [#allocation16], %s918_s21, %s918_s21, %s919_s22   ;;  %v476_v6 = vld [vmem:[#allocation13] ss:$0 sm:$0xff] }
 0x259   :  { %s927_s4 = smov [#allocation14]  }
 0x25a   :  { %s426_s20 = sshll.u32 %s927_s4, 4  ;;  %s427_s20 = int_to_ptr.vmem [resolvable:$true] %s426_s20 }
 0x25b   :  { %s882_s28 = scalar_lea.vmem %s427_s20, 256  ;;  %p887_p3 = scmp.lt.s32.totalorder %s427_s20, %s427_s20 }
 0x25c   :  { %p883_p2 = scmp.ne.s32.totalorder %s427_s20, %s882_s28  ;;  %p888_p4 = scmp.lt.s32.totalorder %s882_s28, %s882_s28 }
 0x25e   :  { %p889_p5 = por %p888_p4, %p887_p3 }
 0x260   :  { %p890_p6 = pnand %p889_p5, %p883_p2 }
 0x312   :  { %v599_v7 = vpop.f32.mrb[2].mxu0 }
 0x313   :  { %v412_v8 = vadd.f32 %v599_v7, %v476_v6  ;;  %v406_v9 = vpop.f32.mrb[3].mxu0 }
 0x314   :  { %v407_v10 = vadd.f32 %v476_v6, %v406_v9 }
 0x315   :  { %420 = vst [vmem:[#allocation14 + $0x8] sm:$0xff] %v412_v8 }
 0x316   :  { %419 = vst [vmem:[#allocation14] sm:$0xff] %v407_v10 }
 0x317   :  { %893 = shalt.err (!%p890_p6)
}
 0x318   :  { %s894_s9 = scalar_lea.hbm %s1142_s7, 256 }
 0x319   :  { %p895_p7 = scmp.ne.s32.totalorder %s1142_s7, %s894_s9  ;;  %p898_p8 = scmp.lt.u32.totalorder %s894_s9, %s1142_s7 }
 0x31b   :  { %p900_p9 = pnand %p898_p8, %p895_p7 }
 0x31d   :  { %903 = shalt.err (!%p900_p9)
}
 0x31e   :  { %432 = dma.vmem_to_hbm [thread:$0]  %s427_s20, 256, %s1142_s7, [#allocation4], %s918_s21, %s918_s21, %s919_s22  }
 0x31f   :  { %912 = dma.done.wait [#allocation4], 256  }
 0x320   :  { %913 = vsyncadd [#allocation4], 4294967040 }
 0x321   :  { %914 = dma.done.wait [#allocation16], 512  }
 0x322   :  { %915 = vsyncadd [#allocation16], 4294966784 }
 0x323   :  { %466 = vsyncpa [#allocation3], 1 }
 0x324   :  { %467 = vsyncpa [#allocation6], 1 }
 0x325   :  { %468 = vsyncpa [#allocation9], 1 }
 0x326   :  { %469 = vsyncpa [#allocation12], 1 }
 0x327   :  { %470 = vsyncpa [#allocation4], 1 }
 0x328   :  { %471 = vsyncpa [#allocation16], 1 }

</bundles_post_ra>
